<compile_context>
chip_gen: v7x
topology: tpu7x:2x2x1
jax: 0.10.0
libtpu: 0.0.40
codegen_flags: <defaults>
</compile_context>

<pallas_src>
import jax
import jax.numpy as jnp
from jax import lax
from jax.experimental import pallas as pl
from jax.experimental.pallas import tpu as pltpu

# --- hyper-params (params.*) ---
NH = 32          # params.nh
NH2 = 32         # params.nh2
MARGIN = 1.0     # params.margin
N = 2 * NH       # 64
NHINPUT = 512
M = 128          # number of columns per weight sample w_i
B = 2            # number of items in data_batch['ws']


def prepare_params(params):
    """One-time parameter prep (hoisted out of the per-call path).

    Returns (key2, b1x, w2a, b2a_col, w2b, b2b_col) where
      key2 = W1 @ key fuses encoder0 and encoder1 into a single matmul, and
      b1x  = [b1; b1] column (encoder1 bias commutes with max/min pooling).
    """
    key_p, w1, b1, w2a, b2a, w2b, b2b = params
    hp = lax.Precision.HIGHEST
    key2 = jnp.dot(w1, key_p, precision=hp)                      # (nh, 512)
    b1x = jnp.concatenate([b1, b1], axis=1).reshape(-1, 1)       # (2*nh, 1)
    b2a_c = b2a.reshape(-1, 1)                                   # (nh2, 1)
    b2b_c = b2b.reshape(-1, 1)                                   # (2, 1)
    return key2, b1x, w2a, b2a_c, w2b, b2b_c


def new_forward(ws, prep, margin=MARGIN):
    """ws: (B, NHINPUT, M) float32 (natural layout, no pre-transpose).
    prep: output of prepare_params.  Returns (B, 2) float32."""
    key2, b1x, w2a, b2a_c, w2b, b2b_c = prep
    bsz, nhinput, m = ws.shape
    nh = key2.shape[0]
    nh2 = w2a.shape[0]

    def kernel(key2_ref, ws_ref, b1x_ref, w2a_ref, b2a_ref, w2b_ref, b2b_ref,
               out_ref):
        # Fused encoder0+encoder1 per item (B is tiny -> static unroll), then
        # max/min pooling over each item's M columns (lane-axis reduce; b1
        # commutes with the pooling and is added post-pooling via b1x).
        cols = []
        for i in range(bsz):
            zi = jnp.dot(key2_ref[...], ws_ref[i],
                         preferred_element_type=jnp.float32)    # (nh, M)
            mx = jnp.max(zi, axis=1, keepdims=True)              # (nh, 1)
            mn = jnp.min(zi, axis=1, keepdims=True)              # (nh, 1)
            cols.append(jnp.concatenate([mx, mn], axis=0))       # (2*nh, 1)
        g = jnp.concatenate(cols, axis=1) + b1x_ref[...]         # (2*nh, B)
        # encoder2 in transposed orientation (features on sublanes, batch on lanes)
        h = jnp.dot(w2a_ref[...], g,
                    preferred_element_type=jnp.float32) + b2a_ref[...]
        h = jnp.maximum(h, 0.0)
        h = jnp.dot(w2b_ref[...], h,
                    preferred_element_type=jnp.float32) + b2b_ref[...]
        out_ref[...] = jnp.tanh(h) * margin                      # (2, B)

    flops = (2 * nh * nhinput * bsz * m
             + 2 * nh2 * (2 * nh) * bsz
             + 2 * 2 * nh2 * bsz)
    bytes_accessed = 4 * (bsz * nhinput * m + nh * nhinput
                          + nh2 * 2 * nh + 2 * nh2
                          + 2 * nh + nh2 + 2 + 2 * bsz)

    vmem = pl.BlockSpec(memory_space=pltpu.MemorySpace.VMEM)
    out_t = pl.pallas_call(
        kernel,
        out_shape=jax.ShapeDtypeStruct((2, bsz), jnp.float32),
        in_specs=[vmem] * 7,
        out_specs=vmem,
        cost_estimate=pl.CostEstimate(
            flops=flops, transcendentals=2 * bsz,
            bytes_accessed=bytes_accessed),
    )(key2, ws, b1x, w2a, b2a_c, w2b, b2b_c)
    # 16-byte reorientation kept outside the kernel (sub-tile in-kernel transpose
    # lowering is not guaranteed at 2x2; this op is negligible).
    return out_t.T                                               # (B, 2)


def init_params(rng):
    """Deterministic parameter init matching the module's shapes."""
    ks = jax.random.split(rng, 7)
    u = lambda k, shape, bound: jax.random.uniform(
        k, shape, jnp.float32, minval=-bound, maxval=bound)
    key_p = u(ks[0], (N, NHINPUT), 1.0 / jnp.sqrt(float(NHINPUT)))   # regressor.key
    w1 = u(ks[1], (NH, N), 1.0 / jnp.sqrt(float(N)))                 # encoder1 Linear(N, NH)
    b1 = u(ks[2], (1, NH), 1.0 / jnp.sqrt(float(N)))
    w2a = u(ks[3], (NH2, 2 * NH), 1.0 / jnp.sqrt(float(2 * NH)))     # encoder2 Linear(2*NH, NH2)
    b2a = u(ks[4], (1, NH2), 1.0 / jnp.sqrt(float(2 * NH)))
    w2b = u(ks[5], (2, NH2), 1.0 / jnp.sqrt(float(NH2)))             # encoder2 Linear(NH2, 2)
    b2b = u(ks[6], (1, 2), 1.0 / jnp.sqrt(float(NH2)))
    return key_p, w1, b1, w2a, b2a, w2b, b2b


def reference_forward(ws, params):
    """Pure-JAX reference mirroring the PyTorch forward (unfused)."""
    key_p, w1, b1, w2a, b2a, w2b, b2b = params
    hp = lax.Precision.HIGHEST
    feats = []
    for i in range(ws.shape[0]):
        a = jnp.dot(key_p, ws[i], precision=hp)                  # (N, M)
        z = jnp.dot(a.T, w1.T, precision=hp) + b1                # (M, NH)
        feats.append(jnp.concatenate([z.max(axis=0), z.min(axis=0)], axis=0))
    h = jnp.stack(feats, axis=0)                                 # (B, 2*NH)
    h = jnp.maximum(jnp.dot(h, w2a.T, precision=hp) + b2a, 0.0)
    h = jnp.dot(h, w2b.T, precision=hp) + b2b
    return jnp.tanh(h) * MARGIN


if __name__ == "__main__":
    rng = jax.random.PRNGKey(0)
    rng_p, rng_x = jax.random.split(rng)
    params = init_params(rng_p)
    # One-time parameter prep (NOT in the per-call path).
    prep = jax.block_until_ready(prepare_params(params))
    # data_batch['ws'] -> stacked weight samples (per-sample bias b_i is unused
    # by regressor.forward, so it is not materialized here)
    ws = jax.random.normal(rng_x, (B, NHINPUT, M), jnp.float32)

    fwd = jax.jit(new_forward)
    out = jax.block_until_ready(fwd(ws, prep))
    ref = jax.block_until_ready(reference_forward(ws, params))

    assert out.shape == (B, 2), out.shape
    assert jnp.allclose(out, ref, rtol=1e-3, atol=1e-3), (out, ref)
    print("KERNEL_OK")
</pallas_src>

<mosaic_0001>
module attributes {stable_mosaic.version = 11 : i64} {
  func.func @kernel(%arg0: memref<32x512xf32, #tpu.memory_space<vmem>>, %arg1: memref<2x512x128xf32, #tpu.memory_space<vmem>>, %arg2: memref<64x1xf32, #tpu.memory_space<vmem>>, %arg3: memref<32x64xf32, #tpu.memory_space<vmem>>, %arg4: memref<32x1xf32, #tpu.memory_space<vmem>>, %arg5: memref<2x32xf32, #tpu.memory_space<vmem>>, %arg6: memref<2x1xf32, #tpu.memory_space<vmem>>, %arg7: memref<2x2xf32, #tpu.memory_space<vmem>>) attributes {dimension_semantics = [], scalar_prefetch = 0 : i64, scratch_operands = 0 : i64, tpu.core_type = #tpu.core_type<tc>} {
    %c0 = arith.constant 0 : index
    %c0_0 = arith.constant 0 : index
    %0 = vector.load %arg0[%c0, %c0_0] : memref<32x512xf32, #tpu.memory_space<vmem>>, vector<32x512xf32>
    %c0_1 = arith.constant 0 : index
    %c0_2 = arith.constant 0 : index
    %c0_3 = arith.constant 0 : index
    %1 = vector.load %arg1[%c0_1, %c0_2, %c0_3] : memref<2x512x128xf32, #tpu.memory_space<vmem>>, vector<1x512x128xf32>
    %2 = vector.shape_cast %1 : vector<1x512x128xf32> to vector<512x128xf32>
    %cst = arith.constant dense<0.000000e+00> : vector<32x128xf32>
    %3 = tpu.matmul %0, %2, %cst {dimension_numbers = #tpu.dot_dimension_numbers<[1], [0], [0], [1], [0, 0, 1, 1], [], []>} : vector<32x512xf32>, vector<512x128xf32>, vector<32x128xf32> -> vector<32x128xf32>
    %cst_4 = arith.constant dense<0xFF800000> : vector<32xf32>
    %4 = vector.multi_reduction <maximumf>, %3, %cst_4 [1] : vector<32x128xf32> to vector<32xf32>
    %5 = vector.shape_cast %4 : vector<32xf32> to vector<32x1xf32>
    %cst_5 = arith.constant dense<0x7F800000> : vector<32xf32>
    %6 = vector.multi_reduction <minimumf>, %3, %cst_5 [1] : vector<32x128xf32> to vector<32xf32>
    %7 = vector.shape_cast %6 : vector<32xf32> to vector<32x1xf32>
    %8 = tpu.concatenate %5, %7 in 0 : vector<32x1xf32>, vector<32x1xf32> -> vector<64x1xf32>
    %c0_6 = arith.constant 0 : index
    %c0_7 = arith.constant 0 : index
    %9 = vector.load %arg0[%c0_6, %c0_7] : memref<32x512xf32, #tpu.memory_space<vmem>>, vector<32x512xf32>
    %c1 = arith.constant 1 : index
    %c0_8 = arith.constant 0 : index
    %c0_9 = arith.constant 0 : index
    %10 = vector.load %arg1[%c1, %c0_8, %c0_9] : memref<2x512x128xf32, #tpu.memory_space<vmem>>, vector<1x512x128xf32>
    %11 = vector.shape_cast %10 : vector<1x512x128xf32> to vector<512x128xf32>
    %cst_10 = arith.constant dense<0.000000e+00> : vector<32x128xf32>
    %12 = tpu.matmul %9, %11, %cst_10 {dimension_numbers = #tpu.dot_dimension_numbers<[1], [0], [0], [1], [0, 0, 1, 1], [], []>} : vector<32x512xf32>, vector<512x128xf32>, vector<32x128xf32> -> vector<32x128xf32>
    %cst_11 = arith.constant dense<0xFF800000> : vector<32xf32>
    %13 = vector.multi_reduction <maximumf>, %12, %cst_11 [1] : vector<32x128xf32> to vector<32xf32>
    %14 = vector.shape_cast %13 : vector<32xf32> to vector<32x1xf32>
    %cst_12 = arith.constant dense<0x7F800000> : vector<32xf32>
    %15 = vector.multi_reduction <minimumf>, %12, %cst_12 [1] : vector<32x128xf32> to vector<32xf32>
    %16 = vector.shape_cast %15 : vector<32xf32> to vector<32x1xf32>
    %17 = tpu.concatenate %14, %16 in 0 : vector<32x1xf32>, vector<32x1xf32> -> vector<64x1xf32>
    %18 = tpu.concatenate %8, %17 in 1 : vector<64x1xf32>, vector<64x1xf32> -> vector<64x2xf32>
    %c0_13 = arith.constant 0 : index
    %c0_14 = arith.constant 0 : index
    %19 = vector.load %arg2[%c0_13, %c0_14] : memref<64x1xf32, #tpu.memory_space<vmem>>, vector<64x1xf32>
    %20 = vector.broadcast %19 : vector<64x1xf32> to vector<64x2xf32>
    %21 = arith.addf %18, %20 : vector<64x2xf32>
    %c0_15 = arith.constant 0 : index
    %c0_16 = arith.constant 0 : index
    %22 = vector.load %arg3[%c0_15, %c0_16] : memref<32x64xf32, #tpu.memory_space<vmem>>, vector<32x64xf32>
    %cst_17 = arith.constant dense<0.000000e+00> : vector<32x2xf32>
    %23 = tpu.matmul %22, %21, %cst_17 {dimension_numbers = #tpu.dot_dimension_numbers<[1], [0], [0], [1], [0, 0, 1, 1], [], []>} : vector<32x64xf32>, vector<64x2xf32>, vector<32x2xf32> -> vector<32x2xf32>
    %c0_18 = arith.constant 0 : index
    %c0_19 = arith.constant 0 : index
    %24 = vector.load %arg4[%c0_18, %c0_19] : memref<32x1xf32, #tpu.memory_space<vmem>>, vector<32x1xf32>
    %25 = vector.broadcast %24 : vector<32x1xf32> to vector<32x2xf32>
    %26 = arith.addf %23, %25 : vector<32x2xf32>
    %cst_20 = arith.constant 0.000000e+00 : f32
    %27 = vector.broadcast %cst_20 : f32 to vector<32x2xf32>
    %28 = arith.maximumf %26, %27 : vector<32x2xf32>
    %c0_21 = arith.constant 0 : index
    %c0_22 = arith.constant 0 : index
    %29 = vector.load %arg5[%c0_21, %c0_22] : memref<2x32xf32, #tpu.memory_space<vmem>>, vector<2x32xf32>
    %cst_23 = arith.constant dense<0.000000e+00> : vector<2x2xf32>
    %30 = tpu.matmul %29, %28, %cst_23 {dimension_numbers = #tpu.dot_dimension_numbers<[1], [0], [0], [1], [0, 0, 1, 1], [], []>} : vector<2x32xf32>, vector<32x2xf32>, vector<2x2xf32> -> vector<2x2xf32>
    %c0_24 = arith.constant 0 : index
    %c0_25 = arith.constant 0 : index
    %31 = vector.load %arg6[%c0_24, %c0_25] : memref<2x1xf32, #tpu.memory_space<vmem>>, vector<2x1xf32>
    %32 = vector.broadcast %31 : vector<2x1xf32> to vector<2x2xf32>
    %33 = arith.addf %30, %32 : vector<2x2xf32>
    %34 = math.tanh %33 : vector<2x2xf32>
    %cst_26 = arith.constant 1.000000e+00 : f32
    %35 = vector.broadcast %cst_26 : f32 to vector<2x2xf32>
    %36 = arith.mulf %34, %35 : vector<2x2xf32>
    %c0_27 = arith.constant 0 : index
    %c0_28 = arith.constant 0 : index
    %37 = vector.load %arg7[%c0_27, %c0_28] : memref<2x2xf32, #tpu.memory_space<vmem>>, vector<2x2xf32>
    tpu.vector_store %arg7[%c0_27, %c0_28], %36 {strides = array<i32>} : memref<2x2xf32, #tpu.memory_space<vmem>>, vector<2x2xf32>,
    return
  }
}

</mosaic_0001>

<bundles_post_ra>
// kernel: new_forward.1
= control target key start
LH: loop header
LB: loop body
LE: loop exit
PB: predicated region body
PF: predicated region fallthrough
CT: control target
= control target key end

     0   :  { %12 = vsyncpa [#allocation3], 0  ;;  %s1546_s0 = inlined_call_operand.hbm [shape: f32[32,512], index: 0, kind: input, shape index: {}]   ;;  %s1547_s1 = inlined_call_operand.hbm [shape: f32[2,512,128], index: 1, kind: input, shape index: {}]   ;;  %s1548_s2 = inlined_call_operand.vmem [shape: f32[64,1], index: 2, kind: input, shape index: {}]   ;;  %s1549_s3 = inlined_call_operand.vmem [shape: f32[32,64], index: 3, kind: input, shape index: {}]   ;;  %s1550_s4 = inlined_call_operand.vmem [shape: f32[32,1], index: 4, kind: input, shape index: {}]   ;;  %s1551_s5 = inlined_call_operand.vmem [shape: f32[2,32], index: 5, kind: input, shape index: {}]   ;;  %s1552_s6 = inlined_call_operand.vmem [shape: f32[2,1], index: 6, kind: input, shape index: {}]   ;;  %s1553_s7 = inlined_call_operand.vmem [shape: f32[2,2], index: 7, kind: output, shape index: {}]  }
   0x1   :  { %13 = vsyncpa [#allocation5], 0  ;;  %s1332_s24 = smov [#allocation2]   ;;  %s1284_s28 = scalar_lea.hbm %s1546_s0, 2048 }
   0x2   :  { %s19_s25 = sshll.u32 %s1332_s24, 4  ;;  %p1285_p0 = scmp.ne.s32.totalorder %s1546_s0, %s1284_s28  ;;  %s20_s25 = int_to_ptr.vmem [resolvable:$true] %s19_s25 }
   0x3   :  { %p1288_p1 = scmp.lt.u32.totalorder %s1284_s28, %s1546_s0 }
   0x5   :  { %p1290_p2 = pnand %p1288_p1, %p1285_p0 }
   0x7   :  { %1293 = shalt.err (!%p1290_p2)
}
   0x8   :  { %s1294_s10 = scalar_lea.vmem %s20_s25, 2048  ;;  %p1299_p4 = scmp.lt.s32.totalorder %s20_s25, %s20_s25 }
   0x9   :  { %p1295_p3 = scmp.ne.s32.totalorder %s20_s25, %s1294_s10  ;;  %p1300_p5 = scmp.lt.s32.totalorder %s1294_s10, %s1294_s10 }
   0xb   :  { %p1301_p6 = por %p1300_p5, %p1299_p4 }
   0xd   :  { %p1302_p7 = pnand %p1301_p6, %p1295_p3 }
   0xf   :  { %1305 = shalt.err (!%p1302_p7)
}
  0x10   :  { %s1333_s11 = smov 512   ;;  %s1334_s12 = smov 32  }
  0x11   :  { %25 = dma.hbm_to_vmem [thread:$0]  %s1546_s0, 2048, %s20_s25, [#allocation3], %s1333_s11, %s1333_s11, %s1334_s12  }
  0x12   :  { %s1335_s15 = smov [#allocation4]   ;;  %s1306_s19 = scalar_lea.hbm %s1547_s1, 16384 }
  0x13   :  { %s31_s16 = sshll.u32 %s1335_s15, 4  ;;  %p1307_p8 = scmp.ne.s32.totalorder %s1547_s1, %s1306_s19  ;;  %s32_s16 = int_to_ptr.vmem [resolvable:$true] %s31_s16 }
  0x14   :  { %p1310_p9 = scmp.lt.u32.totalorder %s1306_s19, %s1547_s1 }
  0x16   :  { %p1312_p10 = pnand %p1310_p9, %p1307_p8 }
  0x18   :  { %1315 = shalt.err (!%p1312_p10)
}
  0x19   :  { %s1316_s24 = scalar_lea.vmem %s32_s16, 16384  ;;  %p1321_p12 = scmp.lt.s32.totalorder %s32_s16, %s32_s16 }
  0x1a   :  { %p1317_p11 = scmp.ne.s32.totalorder %s32_s16, %s1316_s24  ;;  %p1322_p13 = scmp.lt.s32.totalorder %s1316_s24, %s1316_s24 }
  0x1c   :  { %p1323_p0 = por %p1322_p13, %p1321_p12 }
  0x1e   :  { %p1324_p1 = pnand %p1323_p0, %p1317_p11 }
  0x20   :  { %1327 = shalt.err (!%p1324_p1)
}
  0x21   :  { %s1336_s0 = smov 128   ;;  %s1337_s25 = smov 8  }
  0x22   :  { %37 = dma.hbm_to_vmem [thread:$0]  %s1547_s1, 16384, %s32_s16, [#allocation5], %s1336_s0, %s1336_s0, %s1337_s25  }
  0x23   :  { %1328 = dma.done.wait [#allocation3], 2048  }
  0x24   :  { %1329 = vsyncadd [#allocation3], 4294965248 }
  0x25   :  { %1330 = dma.done.wait [#allocation5], 16384  }
  0x26   :  { %1331 = vsyncadd [#allocation5], 4294950912  ;;  %v86_v0 = vld [vmem:[#allocation4 + $0x80] sm:$0xff]  ;;  %v87_v1 = vld [vmem:[#allocation4 + $0x88] sm:$0xff]  ;;  %s1339_s18 = smov 1   ;;  %vm696_vm0 = vcmask 523264  }
  0x27   :  { %v118_v2 = vld [vmem:[#allocation4 + $0x180] sm:$0xff]  ;;  %v1119_v3 = vpack.c.bf16 %v87_v1, %v86_v0  ;;  %v119_v4 = vld [vmem:[#allocation4 + $0x188] sm:$0xff]  ;;  %v88_v11 = vld [vmem:[#allocation4 + $0x90] sm:$0xff]  ;;  %vm603_vm1 = vcmask 7168   ;;  %vm1341_vm2 = vmmov 0   ;;  %vm805_vm3 = vcmask 261120  }
  0x28   :  { %v70_v5 = vld [vmem:[#allocation4] sm:$0xff]  ;;  %v71_v6 = vld [vmem:[#allocation4 + $0x8] sm:$0xff]  ;;  %v1151_v7 = vpack.c.bf16 %v119_v4, %v118_v2  ;;  %v89_v13 = vld [vmem:[#allocation4 + $0x98] sm:$0xff]  ;;  %vm880_vm4 = vcmask 9216  }
  0x29   :  { %v1121_v8 = vpack.c.bf16 %v71_v6, %v70_v5  ;;  %v102_v9 = vld [vmem:[#allocation4 + $0x100] sm:$0xff]  ;;  %v103_v10 = vld [vmem:[#allocation4 + $0x108] sm:$0xff]  ;;  %1120 = vmatprep.subr.bf16.mxu0 %v1119_v3  ;;  %v120_v14 = vld [vmem:[#allocation4 + $0x190] sm:$0xff]  ;;  %v1123_v16 = vpack.c.bf16 %v89_v13, %v88_v11 }
  0x2a   :  { %v1153_v12 = vpack.c.bf16 %v103_v10, %v102_v9  ;;  %v121_v15 = vld [vmem:[#allocation4 + $0x198] sm:$0xff]  ;;  %1152 = vmatprep.subr.bf16.mxu1 %v1151_v7  ;;  %v72_v18 = vld [vmem:[#allocation4 + $0x10] sm:$0xff]  ;;  %v90_v23 = vld [vmem:[#allocation4 + $0xa0] sm:$0xff] }
  0x2b   :  { %1122 = vmatpush3.bf16.msra.mxu0 %v1121_v8  ;;  %v1155_v17 = vpack.c.bf16 %v121_v15, %v120_v14  ;;  %v73_v19 = vld [vmem:[#allocation4 + $0x18] sm:$0xff]  ;;  %v104_v20 = vld [vmem:[#allocation4 + $0x110] sm:$0xff]  ;;  %v91_v24 = vld [vmem:[#allocation4 + $0xa8] sm:$0xff] }
  0x2c   :  { %1154 = vmatpush3.bf16.msra.mxu1 %v1153_v12  ;;  %v1125_v21 = vpack.c.bf16 %v73_v19, %v72_v18  ;;  %v105_v22 = vld [vmem:[#allocation4 + $0x118] sm:$0xff]  ;;  %1124 = vmatprep.subr.bf16.mxu0 %v1123_v16  ;;  %v1127_v26 = vpack.c.bf16 %v91_v24, %v90_v23  ;;  %v122_v27 = vld [vmem:[#allocation4 + $0x1a0] sm:$0xff]  ;;  %v123_v28 = vld [vmem:[#allocation4 + $0x1a8] sm:$0xff] }
  0x2d   :  { %1156 = vmatprep.subr.bf16.mxu1 %v1155_v17  ;;  %v1157_v25 = vpack.c.bf16 %v105_v22, %v104_v20  ;;  %v74_v29 = vld [vmem:[#allocation4 + $0x20] sm:$0xff]  ;;  %v1159_v30 = vpack.c.bf16 %v123_v28, %v122_v27  ;;  %v75_v31 = vld [vmem:[#allocation4 + $0x28] sm:$0xff]  ;;  %v92_v35 = vld [vmem:[#allocation4 + $0xb0] sm:$0xff] }
  0x2e   :  { %v106_v32 = vld [vmem:[#allocation4 + $0x120] sm:$0xff]  ;;  %v107_v33 = vld [vmem:[#allocation4 + $0x128] sm:$0xff]  ;;  %v1129_v34 = vpack.c.bf16 %v75_v31, %v74_v29  ;;  %v93_v36 = vld [vmem:[#allocation4 + $0xb8] sm:$0xff] }
  0x2f   :  { %1126 = vmatpush3.bf16.msra.mxu0 %v1125_v21  ;;  %v124_v37 = vld [vmem:[#allocation4 + $0x1b0] sm:$0xff]  ;;  %v1161_v38 = vpack.c.bf16 %v107_v33, %v106_v32  ;;  %v1131_v39 = vpack.c.bf16 %v93_v36, %v92_v35  ;;  %v125_v40 = vld [vmem:[#allocation4 + $0x1b8] sm:$0xff]  ;;  %v94_v46 = vld [vmem:[#allocation4 + $0xc0] sm:$0xff] }
  0x30   :  { %1158 = vmatpush3.bf16.msra.mxu1 %v1157_v25  ;;  %1128 = vmatprep.subr.bf16.mxu0 %v1127_v26  ;;  %v76_v41 = vld [vmem:[#allocation4 + $0x30] sm:$0xff]  ;;  %v77_v42 = vld [vmem:[#allocation4 + $0x38] sm:$0xff]  ;;  %v1163_v43 = vpack.c.bf16 %v125_v40, %v124_v37  ;;  %v95_v47 = vld [vmem:[#allocation4 + $0xc8] sm:$0xff] }
  0x31   :  { %1160 = vmatprep.subr.bf16.mxu1 %v1159_v30  ;;  %v108_v44 = vld [vmem:[#allocation4 + $0x130] sm:$0xff]  ;;  %v109_v45 = vld [vmem:[#allocation4 + $0x138] sm:$0xff]  ;;  %v126_v48 = vld [vmem:[#allocation4 + $0x1c0] sm:$0xff]  ;;  %v1133_v50 = vpack.c.bf16 %v77_v42, %v76_v41  ;;  %v1135_v52 = vpack.c.bf16 %v95_v47, %v94_v46 }
  0x32   :  { %v127_v49 = vld [vmem:[#allocation4 + $0x1c8] sm:$0xff]  ;;  %v1165_v51 = vpack.c.bf16 %v109_v45, %v108_v44  ;;  %v78_v53 = vld [vmem:[#allocation4 + $0x40] sm:$0xff]  ;;  %v96_v58 = vld [vmem:[#allocation4 + $0xd0] sm:$0xff] }
  0x33   :  { %1130 = vmatpush3.bf16.msra.mxu0 %v1129_v34  ;;  %v79_v54 = vld [vmem:[#allocation4 + $0x48] sm:$0xff]  ;;  %v110_v55 = vld [vmem:[#allocation4 + $0x140] sm:$0xff]  ;;  %v1167_v56 = vpack.c.bf16 %v127_v49, %v126_v48  ;;  %v97_v59 = vld [vmem:[#allocation4 + $0xd8] sm:$0xff] }
  0x34   :  { %1162 = vmatpush3.bf16.msra.mxu1 %v1161_v38  ;;  %1132 = vmatprep.subr.bf16.mxu0 %v1131_v39  ;;  %v111_v57 = vld [vmem:[#allocation4 + $0x148] sm:$0xff]  ;;  %v128_v60 = vld [vmem:[#allocation4 + $0x1d0] sm:$0xff]  ;;  %v129_v61 = vld [vmem:[#allocation4 + $0x1d8] sm:$0xff]  ;;  %v1137_v62 = vpack.c.bf16 %v79_v54, %v78_v53  ;;  %v1139_v0 = vpack.c.bf16 %v97_v59, %v96_v58 }
  0x35   :  { %1164 = vmatprep.subr.bf16.mxu1 %v1163_v43  ;;  %v1169_v63 = vpack.c.bf16 %v111_v57, %v110_v55  ;;  %v80_v1 = vld [vmem:[#allocation4 + $0x50] sm:$0xff]  ;;  %v81_v2 = vld [vmem:[#allocation4 + $0x58] sm:$0xff]  ;;  %v1171_v4 = vpack.c.bf16 %v129_v61, %v128_v60  ;;  %v98_v6 = vld [vmem:[#allocation4 + $0xe0] sm:$0xff] }
  0x36   :  { %v112_v3 = vld [vmem:[#allocation4 + $0x150] sm:$0xff]  ;;  %v113_v5 = vld [vmem:[#allocation4 + $0x158] sm:$0xff]  ;;  %v99_v7 = vld [vmem:[#allocation4 + $0xe8] sm:$0xff]  ;;  %v1141_v10 = vpack.c.bf16 %v81_v2, %v80_v1 }
  0x37   :  { %1134 = vmatpush3.bf16.msra.mxu0 %v1133_v50  ;;  %v130_v8 = vld [vmem:[#allocation4 + $0x1e0] sm:$0xff]  ;;  %v131_v9 = vld [vmem:[#allocation4 + $0x1e8] sm:$0xff]  ;;  %v1173_v13 = vpack.c.bf16 %v113_v5, %v112_v3  ;;  %v1143_v14 = vpack.c.bf16 %v99_v7, %v98_v6  ;;  %v1409_v17 = vld [vmem:[#allocation2 + $0x18] sm:$0xff] }
  0x38   :  { %1166 = vmatpush3.bf16.msra.mxu1 %v1165_v51  ;;  %1136 = vmatprep.subr.bf16.mxu0 %v1135_v52  ;;  %v82_v11 = vld [vmem:[#allocation4 + $0x60] sm:$0xff]  ;;  %v83_v12 = vld [vmem:[#allocation4 + $0x68] sm:$0xff]  ;;  %v1175_v18 = vpack.c.bf16 %v131_v9, %v130_v8  ;;  %v100_v20 = vld [vmem:[#allocation4 + $0xf0] sm:$0xff] }
  0x39   :  { %1168 = vmatprep.subr.bf16.mxu1 %v1167_v56  ;;  %v114_v15 = vld [vmem:[#allocation4 + $0x160] sm:$0xff]  ;;  %v1407_v16 = vld [vmem:[#allocation2 + $0x8] sm:$0xff]  ;;  %v101_v21 = vld [vmem:[#allocation4 + $0xf8] sm:$0xff]  ;;  %283 = vmatprep.mubr.f32.mxu1 %v1409_v17  ;;  %v1145_v24 = vpack.c.bf16 %v83_v12, %v82_v11 }
  0x3a   :  { %v115_v19 = vld [vmem:[#allocation4 + $0x168] sm:$0xff]  ;;  %198 = vmatprep.mubr.f32.mxu0 %v1407_v16  ;;  %v132_v22 = vld [vmem:[#allocation4 + $0x1f0] sm:$0xff]  ;;  %v133_v23 = vld [vmem:[#allocation4 + $0x1f8] sm:$0xff]  ;;  %v1147_v26 = vpack.c.bf16 %v101_v21, %v100_v20 }
  0x3b   :  { %1138 = vmatpush3.bf16.msra.mxu0 %v1137_v62  ;;  %v1177_v25 = vpack.c.bf16 %v115_v19, %v114_v15  ;;  %v84_v27 = vld [vmem:[#allocation4 + $0x70] sm:$0xff]  ;;  %v85_v28 = vld [vmem:[#allocation4 + $0x78] sm:$0xff]  ;;  %v1179_v30 = vpack.c.bf16 %v133_v23, %v132_v22  ;;  %v337_v32 = vld [vmem:[#allocation4 + $0x280] sm:$0xff] }
  0x3c   :  { %1170 = vmatpush3.bf16.msra.mxu1 %v1169_v63  ;;  %1140 = vmatprep.subr.bf16.mxu0 %v1139_v0  ;;  %v116_v29 = vld [vmem:[#allocation4 + $0x170] sm:$0xff]  ;;  %v117_v31 = vld [vmem:[#allocation4 + $0x178] sm:$0xff]  ;;  %v338_v33 = vld [vmem:[#allocation4 + $0x288] sm:$0xff]  ;;  %v1149_v36 = vpack.c.bf16 %v85_v28, %v84_v27 }
  0x3d   :  { %1172 = vmatprep.subr.bf16.mxu1 %v1171_v4  ;;  %v369_v34 = vld [vmem:[#allocation4 + $0x380] sm:$0xff]  ;;  %v370_v35 = vld [vmem:[#allocation4 + $0x388] sm:$0xff]  ;;  %v1181_v37 = vpack.c.bf16 %v117_v31, %v116_v29  ;;  %v1183_v38 = vpack.c.bf16 %v338_v33, %v337_v32  ;;  %v339_v44 = vld [vmem:[#allocation4 + $0x290] sm:$0xff] }
  0x3e   :  { %v321_v39 = vld [vmem:[#allocation4 + $0x200] sm:$0xff]  ;;  %v322_v40 = vld [vmem:[#allocation4 + $0x208] sm:$0xff]  ;;  %v1215_v42 = vpack.c.bf16 %v370_v35, %v369_v34  ;;  %v340_v45 = vld [vmem:[#allocation4 + $0x298] sm:$0xff] }
  0x3f   :  { %1142 = vmatpush3.bf16.msra.mxu0 %v1141_v10  ;;  %v353_v41 = vld [vmem:[#allocation4 + $0x300] sm:$0xff]  ;;  %v354_v43 = vld [vmem:[#allocation4 + $0x308] sm:$0xff]  ;;  %v371_v46 = vld [vmem:[#allocation4 + $0x390] sm:$0xff]  ;;  %v1185_v50 = vpack.c.bf16 %v322_v40, %v321_v39  ;;  %v1187_v52 = vpack.c.bf16 %v340_v45, %v339_v44 }
  0x40   :  { %1174 = vmatpush3.bf16.msra.mxu1 %v1173_v13  ;;  %1144 = vmatprep.subr.bf16.mxu0 %v1143_v14  ;;  %v372_v47 = vld [vmem:[#allocation4 + $0x398] sm:$0xff]  ;;  %v1413_v48 = vld [vmem:[#allocation2] sm:$0xff]  ;;  %v1415_v49 = vld [vmem:[#allocation2 + $0x10] sm:$0xff]  ;;  %v1217_v51 = vpack.c.bf16 %v354_v43, %v353_v41 }
  0x41   :  { %1176 = vmatprep.subr.bf16.mxu1 %v1175_v18  ;;  %v323_v53 = vld [vmem:[#allocation4 + $0x210] sm:$0xff]  ;;  %v324_v54 = vld [vmem:[#allocation4 + $0x218] sm:$0xff]  ;;  %v1219_v56 = vpack.c.bf16 %v372_v47, %v371_v46  ;;  %v341_v58 = vld [vmem:[#allocation4 + $0x2a0] sm:$0xff] }
  0x42   :  { %v355_v55 = vld [vmem:[#allocation4 + $0x310] sm:$0xff]  ;;  %v356_v57 = vld [vmem:[#allocation4 + $0x318] sm:$0xff]  ;;  %v342_v59 = vld [vmem:[#allocation4 + $0x2a8] sm:$0xff]  ;;  %v1189_v63 = vpack.c.bf16 %v324_v54, %v323_v53 }
  0x43   :  { %1146 = vmatpush3.bf16.msra.mxu0 %v1145_v24  ;;  %v373_v60 = vld [vmem:[#allocation4 + $0x3a0] sm:$0xff]  ;;  %v374_v61 = vld [vmem:[#allocation4 + $0x3a8] sm:$0xff]  ;;  %v1421_v1 = vld [vmem:[#allocation2 + $0x38] sm:$0xff]  ;;  %v1221_v3 = vpack.c.bf16 %v356_v57, %v355_v55  ;;  %v1191_v4 = vpack.c.bf16 %v342_v59, %v341_v58 }
  0x44   :  { %1178 = vmatpush3.bf16.msra.mxu1 %v1177_v25  ;;  %1148 = vmatprep.subr.bf16.mxu0 %v1147_v26  ;;  %v1418_v62 = vld [vmem:[#allocation2 + $0x28] sm:$0xff]  ;;  %v325_v0 = vld [vmem:[#allocation4 + $0x220] sm:$0xff]  ;;  %v1425_v7 = vld [vmem:[#allocation2 + $0x30] sm:$0xff]  ;;  %v1223_v8 = vpack.c.bf16 %v374_v61, %v373_v60 }
  0x45   :  { %1180 = vmatprep.subr.bf16.mxu1 %v1179_v30  ;;  %v1423_v2 = vld [vmem:[#allocation2 + $0x20] sm:$0xff]  ;;  %v326_v5 = vld [vmem:[#allocation4 + $0x228] sm:$0xff]  ;;  %v343_v10 = vld [vmem:[#allocation4 + $0x2b0] sm:$0xff] }
  0x46   :  { %v357_v6 = vld [vmem:[#allocation4 + $0x320] sm:$0xff]  ;;  %v358_v9 = vld [vmem:[#allocation4 + $0x328] sm:$0xff]  ;;  %v344_v11 = vld [vmem:[#allocation4 + $0x2b8] sm:$0xff]  ;;  %v1193_v15 = vpack.c.bf16 %v326_v5, %v325_v0 }
  0x47   :  { %1150 = vmatpush3.bf16.msra.mxu0 %v1149_v36  ;;  %v375_v12 = vld [vmem:[#allocation4 + $0x3b0] sm:$0xff]  ;;  %v376_v13 = vld [vmem:[#allocation4 + $0x3b8] sm:$0xff]  ;;  %v1431_v18 = vld [vmem:[#allocation2 + $0x48] sm:$0xff]  ;;  %v1225_v21 = vpack.c.bf16 %v358_v9, %v357_v6  ;;  %v1195_v22 = vpack.c.bf16 %v344_v11, %v343_v10 }
  0x48   :  { %1182 = vmatpush3.bf16.msra.mxu1 %v1181_v37  ;;  %1184 = vmatprep.subr.bf16.mxu0 %v1183_v38  ;;  %v327_v14 = vld [vmem:[#allocation4 + $0x230] sm:$0xff]  ;;  %v1433_v19 = vld [vmem:[#allocation2 + $0x58] sm:$0xff]  ;;  %v1435_v20 = vld [vmem:[#allocation2 + $0x40] sm:$0xff]  ;;  %v1227_v26 = vpack.c.bf16 %v376_v13, %v375_v12 }
  0x49   :  { %1216 = vmatprep.subr.bf16.mxu1 %v1215_v42  ;;  %v328_v23 = vld [vmem:[#allocation4 + $0x238] sm:$0xff]  ;;  %v359_v24 = vld [vmem:[#allocation4 + $0x330] sm:$0xff]  ;;  %v345_v28 = vld [vmem:[#allocation4 + $0x2c0] sm:$0xff] }
  0x4a   :  { %199 = vmatmul.mubr.f32.vlgmr.msra.gmra.mrb[0].mxu0 %v1413_v48  ;;  %v1437_v25 = vld [vmem:[#allocation2 + $0x50] sm:$0xff]  ;;  %v360_v27 = vld [vmem:[#allocation4 + $0x338] sm:$0xff]  ;;  %v346_v29 = vld [vmem:[#allocation4 + $0x2c8] sm:$0xff]  ;;  %v1197_v33 = vpack.c.bf16 %v328_v23, %v327_v14 }
  0x4b   :  { %284 = vmatmul.mubr.f32.vlgmr.msra.gmra.mrb[0].mxu1 %v1415_v49  ;;  %1186 = vmatpush3.bf16.msra.mxu0 %v1185_v50  ;;  %v377_v30 = vld [vmem:[#allocation4 + $0x3c0] sm:$0xff]  ;;  %v378_v31 = vld [vmem:[#allocation4 + $0x3c8] sm:$0xff]  ;;  %v1445_v35 = vld [vmem:[#allocation2 + $0x78] sm:$0xff]  ;;  %v1229_v37 = vpack.c.bf16 %v360_v27, %v359_v24  ;;  %v1199_v38 = vpack.c.bf16 %v346_v29, %v345_v28 }
  0x4c   :  { %1218 = vmatpush3.bf16.msra.mxu1 %v1217_v51  ;;  %1188 = vmatprep.subr.bf16.mxu0 %v1187_v52  ;;  %v329_v32 = vld [vmem:[#allocation4 + $0x240] sm:$0xff]  ;;  %v1443_v34 = vld [vmem:[#allocation2 + $0x68] sm:$0xff]  ;;  %v1449_v41 = vld [vmem:[#allocation2 + $0x70] sm:$0xff]  ;;  %v1231_v42 = vpack.c.bf16 %v378_v31, %v377_v30 }
  0x4d   :  { %1220 = vmatprep.subr.bf16.mxu1 %v1219_v56  ;;  %203 = vmatprep.mubr.f32.mxu0 %v1418_v62  ;;  %v1447_v36 = vld [vmem:[#allocation2 + $0x60] sm:$0xff]  ;;  %v330_v39 = vld [vmem:[#allocation4 + $0x248] sm:$0xff]  ;;  %v347_v44 = vld [vmem:[#allocation4 + $0x2d0] sm:$0xff] }
  0x4e   :  { %288 = vmatprep.mubr.f32.mxu1 %v1421_v1  ;;  %204 = vmatmul.mubr.f32.gmra.mrb[2].mxu0 %v1423_v2  ;;  %v361_v40 = vld [vmem:[#allocation4 + $0x340] sm:$0xff]  ;;  %v362_v43 = vld [vmem:[#allocation4 + $0x348] sm:$0xff]  ;;  %v348_v45 = vld [vmem:[#allocation4 + $0x2d8] sm:$0xff]  ;;  %v1201_v50 = vpack.c.bf16 %v330_v39, %v329_v32 }
  0x4f   :  { %1190 = vmatpush3.bf16.msra.mxu0 %v1189_v63  ;;  %289 = vmatmul.mubr.f32.gmra.mrb[2].mxu1 %v1425_v7  ;;  %v379_v46 = vld [vmem:[#allocation4 + $0x3d0] sm:$0xff]  ;;  %v380_v47 = vld [vmem:[#allocation4 + $0x3d8] sm:$0xff]  ;;  %v1233_v51 = vpack.c.bf16 %v362_v43, %v361_v40  ;;  %v1203_v52 = vpack.c.bf16 %v348_v45, %v347_v44  ;;  %v349_v58 = vld [vmem:[#allocation4 + $0x2e0] sm:$0xff] }
  0x50   :  { %1222 = vmatpush3.bf16.msra.mxu1 %v1221_v3  ;;  %1192 = vmatprep.subr.bf16.mxu0 %v1191_v4  ;;  %v331_v53 = vld [vmem:[#allocation4 + $0x250] sm:$0xff]  ;;  %v332_v54 = vld [vmem:[#allocation4 + $0x258] sm:$0xff]  ;;  %v1235_v56 = vpack.c.bf16 %v380_v47, %v379_v46  ;;  %v350_v59 = vld [vmem:[#allocation4 + $0x2e8] sm:$0xff] }
  0x51   :  { %1224 = vmatprep.subr.bf16.mxu1 %v1223_v8  ;;  %208 = vmatprep.mubr.f32.mxu0 %v1431_v18  ;;  %v363_v55 = vld [vmem:[#allocation4 + $0x350] sm:$0xff]  ;;  %v364_v57 = vld [vmem:[#allocation4 + $0x358] sm:$0xff]  ;;  %v381_v60 = vld [vmem:[#allocation4 + $0x3e0] sm:$0xff]  ;;  %v1205_v63 = vpack.c.bf16 %v332_v54, %v331_v53  ;;  %v1207_v3 = vpack.c.bf16 %v350_v59, %v349_v58 }
  0x52   :  { %293 = vmatprep.mubr.f32.mxu1 %v1433_v19  ;;  %209 = vmatmul.mubr.f32.gmra.mrb[4].mxu0 %v1435_v20  ;;  %v382_v61 = vld [vmem:[#allocation4 + $0x3e8] sm:$0xff]  ;;  %v1237_v0 = vpack.c.bf16 %v364_v57, %v363_v55  ;;  %v333_v4 = vld [vmem:[#allocation4 + $0x260] sm:$0xff]  ;;  %v351_v10 = vld [vmem:[#allocation4 + $0x2f0] sm:$0xff] }
  0x53   :  { %1194 = vmatpush3.bf16.msra.mxu0 %v1193_v15  ;;  %294 = vmatmul.mubr.f32.gmra.mrb[4].mxu1 %v1437_v25  ;;  %v334_v5 = vld [vmem:[#allocation4 + $0x268] sm:$0xff]  ;;  %v365_v6 = vld [vmem:[#allocation4 + $0x360] sm:$0xff]  ;;  %v1239_v8 = vpack.c.bf16 %v382_v61, %v381_v60  ;;  %v352_v11 = vld [vmem:[#allocation4 + $0x2f8] sm:$0xff] }
  0x54   :  { %1226 = vmatpush3.bf16.msra.mxu1 %v1225_v21  ;;  %1196 = vmatprep.subr.bf16.mxu0 %v1195_v22  ;;  %v366_v9 = vld [vmem:[#allocation4 + $0x368] sm:$0xff]  ;;  %v383_v12 = vld [vmem:[#allocation4 + $0x3f0] sm:$0xff]  ;;  %v1209_v13 = vpack.c.bf16 %v334_v5, %v333_v4  ;;  %v1211_v14 = vpack.c.bf16 %v352_v11, %v351_v10  ;;  %v336_v21 = vld [vmem:[#allocation4 + $0x278] sm:$0xff] }
  0x55   :  { %1228 = vmatprep.subr.bf16.mxu1 %v1227_v26  ;;  %213 = vmatprep.mubr.f32.mxu0 %v1443_v34  ;;  %v335_v15 = vld [vmem:[#allocation4 + $0x270] sm:$0xff]  ;;  %v368_v24 = vld [vmem:[#allocation4 + $0x378] sm:$0xff] }
  0x56   :  { %298 = vmatprep.mubr.f32.mxu1 %v1445_v35  ;;  %214 = vmatmul.mubr.f32.gmra.mrb[6].mxu0 %v1447_v36  ;;  %v367_v23 = vld [vmem:[#allocation4 + $0x370] sm:$0xff]  ;;  %v1213_v26 = vpack.c.bf16 %v336_v21, %v335_v15  ;;  %v613_v15 = vld [vmem:[%s1548_s2 + $0x8] sm:$0xff]  ;;  %v612_v21 = vld [vmem:[%s1548_s2] sm:$0xff] }
  0x57   :  { %1198 = vmatpush3.bf16.msra.mxu0 %v1197_v33  ;;  %299 = vmatmul.mubr.f32.gmra.mrb[6].mxu1 %v1449_v41  ;;  %v1245_v27 = vpack.c.bf16 %v368_v24, %v367_v23  ;;  %v615_v23 = vld [vmem:[%s1548_s2 + $0x18] sm:$0xff]  ;;  %v616_v24 = vld [vmem:[%s1548_s2 + $0x20] sm:$0xff] }
  0x58   :  { %1230 = vmatpush3.bf16.msra.mxu1 %v1229_v37  ;;  %1200 = vmatprep.subr.bf16.mxu0 %v1199_v38 }
  0x59   :  { %1232 = vmatprep.subr.bf16.mxu1 %v1231_v42  ;;  %449 = vmatprep.mubr.f32.mxu0 %v1407_v16  ;;  %v384_v16 = vld [vmem:[#allocation4 + $0x3f8] sm:$0xff] }
  0x5a   :  { %534 = vmatprep.mubr.f32.mxu1 %v1409_v17  ;;  %v1241_v17 = vpack.c.bf16 %v366_v9, %v365_v6  ;;  %v1243_v22 = vpack.c.bf16 %v384_v16, %v383_v12 }
  0x5b   :  { %1202 = vmatpush3.bf16.msra.mxu0 %v1201_v50 }
  0x5c   :  { %1234 = vmatpush3.bf16.msra.mxu1 %v1233_v51  ;;  %1204 = vmatprep.subr.bf16.mxu0 %v1203_v52 }
  0x5d   :  { %1236 = vmatprep.subr.bf16.mxu1 %v1235_v56 }
  0x5f   :  { %1206 = vmatpush3.bf16.msra.mxu0 %v1205_v63 }
  0x60   :  { %1238 = vmatpush3.bf16.msra.mxu1 %v1237_v0  ;;  %1208 = vmatprep.subr.bf16.mxu0 %v1207_v3 }
  0x61   :  { %1240 = vmatprep.subr.bf16.mxu1 %v1239_v8 }
  0x63   :  { %1210 = vmatpush3.bf16.msra.mxu0 %v1209_v13 }
  0x64   :  { %1242 = vmatpush3.bf16.msra.mxu1 %v1241_v17  ;;  %1212 = vmatprep.subr.bf16.mxu0 %v1211_v14 }
  0x65   :  { %1244 = vmatprep.subr.bf16.mxu1 %v1243_v22  ;;  %v614_v22 = vld [vmem:[%s1548_s2 + $0x10] sm:$0xff] }
  0x67   :  { %1214 = vmatpush3.bf16.msra.mxu0 %v1213_v26  ;;  %v617_v26 = vld [vmem:[%s1548_s2 + $0x28] sm:$0xff] }
  0x68   :  { %1246 = vmatpush3.bf16.msra.mxu1 %v1245_v27  ;;  %v618_v27 = vld [vmem:[%s1548_s2 + $0x30] sm:$0xff] }
  0x6a   :  { %450 = vmatmul.mubr.f32.vlgmr.msra.gmra.mrb[8].mxu0 %v1413_v48  ;;  %v1338_v48 = vmov 0  }
  0x6b   :  { %535 = vmatmul.mubr.f32.vlgmr.msra.gmra.mrb[8].mxu1 %v1415_v49  ;;  %454 = vmatprep.mubr.f32.mxu0 %v1418_v62 }
  0x6c   :  { %539 = vmatprep.mubr.f32.mxu1 %v1421_v1  ;;  %1281 = vset.pattern.permute.xlu1 %v1338_v48 }
  0x6d   :  { %1280 = vset.pattern.permute.xlu0 %v1338_v48 }
  0x6e   :  { %455 = vmatmul.mubr.f32.gmra.mrb[10].mxu0 %v1423_v2 }
  0x6f   :  { %540 = vmatmul.mubr.f32.gmra.mrb[10].mxu1 %v1425_v7  ;;  %459 = vmatprep.mubr.f32.mxu0 %v1431_v18 }
  0x70   :  { %544 = vmatprep.mubr.f32.mxu1 %v1433_v19 }
  0x72   :  { %460 = vmatmul.mubr.f32.gmra.mrb[12].mxu0 %v1435_v20 }
  0x73   :  { %545 = vmatmul.mubr.f32.gmra.mrb[12].mxu1 %v1437_v25  ;;  %464 = vmatprep.mubr.f32.mxu0 %v1443_v34 }
  0x74   :  { %549 = vmatprep.mubr.f32.mxu1 %v1445_v35 }
  0x76   :  { %465 = vmatmul.mubr.f32.gmra.mrb[14].mxu0 %v1447_v36 }
  0x77   :  { %550 = vmatmul.mubr.f32.gmra.mrb[14].mxu1 %v1449_v41 }
 0x11d   :  { %v925_v49 = vpop.f32.mrb[0].mxu0 }
 0x11e   :  { %v969_v62 = vpop.f32.mrb[0].mxu1  ;;  %v926_v1 = vpop.f32.mrb[1].mxu0 }
 0x11f   :  { %v927_v2 = vadd.f32 %v926_v1, %v925_v49  ;;  %v970_v7 = vpop.f32.mrb[1].mxu1 }
 0x120   :  { %v971_v18 = vadd.f32 %v970_v7, %v969_v62 }
 0x121   :  { %v928_v19 = vpop.f32.mrb[2].mxu0 }
 0x122   :  { %v286_v20 = vadd.f32 %v971_v18, %v927_v2  ;;  %v972_v25 = vpop.f32.mrb[2].mxu1  ;;  %v929_v28 = vpop.f32.mrb[3].mxu0 }
 0x123   :  { %v930_v29 = vadd.f32 %v929_v28, %v928_v19  ;;  %v973_v30 = vpop.f32.mrb[3].mxu1 }
 0x124   :  { %304 = vmax.xlane.f32.xlu0 %v286_v20  ;;  %v974_v31 = vadd.f32 %v973_v30, %v972_v25 }
 0x125   :  { %v931_v32 = vpop.f32.mrb[4].mxu0 }
 0x126   :  { %v291_v33 = vadd.f32 %v974_v31, %v930_v29  ;;  %v975_v34 = vpop.f32.mrb[4].mxu1  ;;  %v932_v35 = vpop.f32.mrb[5].mxu0  ;;  %v619_v29 = vld [vmem:[%s1548_s2 + $0x38] sm:$0xff] }
 0x127   :  { %v933_v36 = vadd.f32 %v932_v35, %v931_v32  ;;  %v976_v37 = vpop.f32.mrb[5].mxu1  ;;  %v668_v32 = vld [vmem:[%s1549_s3] sm:$0xff] }
 0x128   :  { %312 = vmin.xlane.f32.xlu0 %v286_v20  ;;  %306 = vmax.xlane.f32.xlu1 %v291_v33  ;;  %v977_v38 = vadd.f32 %v976_v37, %v975_v34  ;;  %v672_v37 = vld [vmem:[%s1550_s4] sm:$0xff] }
 0x129   :  { %v934_v39 = vpop.f32.mrb[6].mxu0  ;;  %1102 = vmatprep.mubr.msk.f32.mxu0 %vm696_vm0, %v668_v32 }
 0x12a   :  { %v978_v40 = vpop.f32.mrb[6].mxu1  ;;  %v935_v41 = vpop.f32.mrb[7].mxu0  ;;  %v296_v42 = vadd.f32 %v977_v38, %v933_v36  ;;  %v673_v36 = vld [vmem:[%s1550_s4 + $0x8] sm:$0xff]  ;;  %v675_v38 = vld [vmem:[%s1550_s4 + $0x18] sm:$0xff] }
 0x12b   :  { %v936_v43 = vadd.f32 %v935_v41, %v934_v39  ;;  %v979_v44 = vpop.f32.mrb[7].mxu1  ;;  %v674_v39 = vld [vmem:[%s1550_s4 + $0x10] sm:$0xff] }
 0x12c   :  { %314 = vmin.xlane.f32.xlu1 %v291_v33  ;;  %v980_v45 = vadd.f32 %v979_v44, %v978_v40  ;;  %308 = vmax.xlane.f32.xlu0 %v296_v42  ;;  %v799_v40 = vld [vmem:[%s1552_s6] sm:$0x3] }
 0x12e   :  { %v301_v46 = vadd.f32 %v980_v45, %v936_v43 }
 0x130   :  { %310 = vmax.xlane.f32.xlu1 %v301_v46 }
 0x13d   :  { %v1013_v47 = vpop.f32.mrb[8].mxu0 }
 0x13e   :  { %v1057_v50 = vpop.f32.mrb[8].mxu1  ;;  %v1014_v51 = vpop.f32.mrb[9].mxu0 }
 0x13f   :  { %v1015_v52 = vadd.f32 %v1014_v51, %v1013_v47  ;;  %v1058_v53 = vpop.f32.mrb[9].mxu1 }
 0x140   :  { %v1059_v54 = vadd.f32 %v1058_v53, %v1057_v50 }
 0x141   :  { %v1016_v55 = vpop.f32.mrb[10].mxu0 }
 0x142   :  { %v1060_v56 = vpop.f32.mrb[10].mxu1  ;;  %v1017_v57 = vpop.f32.mrb[11].mxu0  ;;  %v537_v58 = vadd.f32 %v1059_v54, %v1015_v52 }
 0x143   :  { %v1018_v59 = vadd.f32 %v1017_v57, %v1016_v55  ;;  %v1061_v60 = vpop.f32.mrb[11].mxu1 }
 0x144   :  { %v1062_v61 = vadd.f32 %v1061_v60, %v1060_v56  ;;  %555 = vmax.xlane.f32.xlu0 %v537_v58 }
 0x145   :  { %v1019_v63 = vpop.f32.mrb[12].mxu0 }
 0x146   :  { %v1063_v0 = vpop.f32.mrb[12].mxu1  ;;  %v1020_v3 = vpop.f32.mrb[13].mxu0  ;;  %v542_v4 = vadd.f32 %v1062_v61, %v1018_v59 }
 0x147   :  { %v1021_v5 = vadd.f32 %v1020_v3, %v1019_v63  ;;  %v1064_v6 = vpop.f32.mrb[13].mxu1 }
 0x148   :  { %v1065_v8 = vadd.f32 %v1064_v6, %v1063_v0  ;;  %565 = vmin.xlane.f32.xlu1 %v542_v4  ;;  %563 = vmin.xlane.f32.xlu0 %v537_v58 }
 0x149   :  { %v1022_v9 = vpop.f32.mrb[14].mxu0 }
 0x14a   :  { %v547_v10 = vadd.f32 %v1065_v8, %v1021_v5  ;;  %v1066_v11 = vpop.f32.mrb[14].mxu1  ;;  %v1023_v12 = vpop.f32.mrb[15].mxu0 }
 0x14b   :  { %v1024_v16 = vadd.f32 %v1023_v12, %v1022_v9  ;;  %v1067_v13 = vpop.f32.mrb[15].mxu1 }
 0x14c   :  { %559 = vmax.xlane.f32.xlu1 %v547_v10  ;;  %557 = vmax.xlane.f32.xlu0 %v542_v4  ;;  %v1068_v17 = vadd.f32 %v1067_v13, %v1066_v11 }
 0x14e   :  { %v552_v14 = vadd.f32 %v1068_v17, %v1024_v16 }
 0x150   :  { %567 = vmin.xlane.f32.xlu0 %v547_v10 }
 0x15d   :  { %627 = vperm.xlu1 %1281, %v613_v15  }
 0x166   :  { %622 = vperm.xlu0 %1280, %v612_v21  }
 0x181   :  { %561 = vmax.xlane.f32.xlu1 %v552_v14 }
 0x185   :  { %316 = vmin.xlane.f32.xlu1 %v296_v42  ;;  %318 = vmin.xlane.f32.xlu0 %v301_v46 }
 0x189   :  { %569 = vmin.xlane.f32.xlu1 %v552_v14 }
 0x19a   :  { %632 = vperm.xlu1 %1281, %v614_v22   ;;  %v669_v22 = vld [vmem:[%s1549_s3 + $0x8] sm:$0xff] }
 0x19e   :  { %637 = vperm.xlu1 %1281, %v615_v23   ;;  %v670_v23 = vld [vmem:[%s1549_s3 + $0x10] sm:$0xff] }
 0x1a2   :  { %642 = vperm.xlu1 %1281, %v616_v24   ;;  %v671_v24 = vld [vmem:[%s1549_s3 + $0x18] sm:$0xff] }
 0x1a6   :  { %647 = vperm.xlu1 %1281, %v617_v26   ;;  %v1340_v26 = vmov 0.0|0.0  }
 0x1a7   :  { %1263 = vmatprep.subr.bf16.mxu1 %v1340_v26 }
 0x1aa   :  { %652 = vperm.xlu1 %1281, %v618_v27   ;;  %v1342_v27 = vmov 0.0  }
 0x1ab   :  { %1116 = vmatprep.mubr.msk.f32.mxu1 %vm1341_vm2, %v1342_v27 }
 0x1b1   :  { %v305_v48 = vpop.xlane.xlu0 %304 }
 0x1b5   :  { %v307_v49 = vpop.xlane.xlu1 %306  ;;  %v1492_v62 = vpop.xlane.xlu0 %312 }
 0x1b9   :  { %v1494_v1 = vpop.xlane.xlu1 %314  ;;  %v309_v2 = vpop.xlane.xlu0 %308 }
 0x1bd   :  { %v311_v7 = vpop.xlane.xlu1 %310 }
 0x1d1   :  { %v556_v18 = vpop.xlane.xlu0 %555 }
 0x1d2   :  { %579 = vrot.lane.b32.xlu1 %v556_v18, %s1339_s18 }
 0x1d5   :  { %v566_v19 = vpop.xlane.xlu1 %565  ;;  %v564_v20 = vpop.xlane.xlu0 %563 }
 0x1d9   :  { %v560_v25 = vpop.xlane.xlu1 %559  ;;  %v558_v28 = vpop.xlane.xlu0 %557 }
 0x1da   :  { %583 = vrot.lane.b32.xlu1 %v560_v25, %s1339_s18  ;;  %581 = vrot.lane.b32.xlu0 %v558_v28, %s1339_s18 }
 0x1dd   :  { %v628_v30 = vpop.permute.xlu1 %627  ;;  %v568_v34 = vpop.xlane.xlu0 %567 }
 0x1de   :  { %657 = vperm.xlu0 %1280, %v619_v29  }
 0x1e2   :  { %589 = vrot.lane.b32.xlu0 %v566_v19, %s1339_s18 }
 0x1e5   :  { %v623_v45 = vpop.permute.xlu0 %622 }
 0x20e   :  { %v562_v31 = vpop.xlane.xlu1 %561 }
 0x20f   :  { %585 = vrot.lane.b32.xlu1 %v562_v31, %s1339_s18 }
 0x212   :  { %v317_v33 = vpop.xlane.xlu1 %316  ;;  %v319_v47 = vpop.xlane.xlu0 %318 }
 0x213   :  { %587 = vrot.lane.b32.xlu1 %v564_v20, %s1339_s18 }
 0x216   :  { %v570_v35 = vpop.xlane.xlu1 %569 }
 0x217   :  { %593 = vrot.lane.b32.xlu0 %v570_v35, %s1339_s18  ;;  %591 = vrot.lane.b32.xlu1 %v568_v34, %s1339_s18 }
 0x21a   :  { %v633_v41 = vpop.permute.xlu1 %632 }
 0x21b   :  { %683 = vperm.xlu0 %1280, %v673_v36   ;;  %678 = vperm.xlu1 %1281, %v672_v37   ;;  %v798_v36 = vld [vmem:[%s1551_s5] sm:$0x3] }
 0x21e   :  { %v638_v42 = vpop.permute.xlu1 %637 }
 0x21f   :  { %693 = vperm.xlu0 %1280, %v675_v38   ;;  %688 = vperm.xlu1 %1281, %v674_v39  }
 0x222   :  { %v643_v43 = vpop.permute.xlu1 %642 }
 0x223   :  { %802 = vperm.xlu1 %1281, %v799_v40  }
 0x226   :  { %v648_v44 = vpop.permute.xlu1 %647 }
 0x22a   :  { %v653_v46 = vpop.permute.xlu1 %652 }
 0x244   :  { %v580_v50 = vpop.permute.xlu1 %579 }
 0x245   :  { %v604_v51 = vsel %vm603_vm1, %v305_v48, %v580_v50 }
 0x246   :  { %v660_v54 = vadd.f32 %v623_v45, %v604_v51 }
 0x24c   :  { %v582_v52 = vpop.permute.xlu0 %581  ;;  %v584_v58 = vpop.permute.xlu1 %583 }
 0x24d   :  { %v605_v53 = vsel %vm603_vm1, %v307_v49, %v582_v52  ;;  %v606_v59 = vsel %vm603_vm1, %v309_v2, %v584_v58 }
 0x24e   :  { %v661_v55 = vadd.f32 %v628_v30, %v605_v53  ;;  %v662_v0 = vadd.f32 %v633_v41, %v606_v59 }
 0x250   :  { %v1247_v56 = vpack.c.bf16 %v661_v55, %v660_v54 }
 0x252   :  { %1248 = vmatprep.subr.bf16.mxu0 %v1247_v56 }
 0x253   :  { %1250 = vmatpush3.bf16.msra.mxu0 %v1247_v56 }
 0x25d   :  { %v658_v57 = vpop.permute.xlu0 %657 }
 0x261   :  { %v590_v60 = vpop.permute.xlu0 %589 }
 0x262   :  { %v609_v4 = vsel %vm603_vm1, %v1494_v1, %v590_v60 }
 0x263   :  { %v665_v9 = vadd.f32 %v648_v44, %v609_v4 }
 0x281   :  { %v586_v61 = vpop.permute.xlu1 %585 }
 0x282   :  { %v607_v63 = vsel %vm603_vm1, %v311_v7, %v586_v61 }
 0x283   :  { %v663_v3 = vadd.f32 %v638_v42, %v607_v63 }
 0x285   :  { %v588_v5 = vpop.permute.xlu1 %587  ;;  %v1251_v6 = vpack.c.bf16 %v663_v3, %v662_v0 }
 0x286   :  { %v608_v8 = vsel %vm603_vm1, %v1492_v62, %v588_v5 }
 0x287   :  { %v664_v10 = vadd.f32 %v643_v43, %v608_v8  ;;  %1252 = vmatprep.subr.bf16.mxu0 %v1251_v6 }
 0x288   :  { %1254 = vmatpush3.bf16.msra.mxu0 %v1251_v6 }
 0x289   :  { %v592_v11 = vpop.permute.xlu1 %591  ;;  %v594_v12 = vpop.permute.xlu0 %593  ;;  %v1255_v16 = vpack.c.bf16 %v665_v9, %v664_v10 }
 0x28a   :  { %v610_v13 = vsel %vm603_vm1, %v317_v33, %v592_v11  ;;  %v611_v17 = vsel %vm603_vm1, %v319_v47, %v594_v12 }
 0x28b   :  { %v666_v14 = vadd.f32 %v653_v46, %v610_v13  ;;  %v667_v15 = vadd.f32 %v658_v57, %v611_v17  ;;  %1256 = vmatprep.subr.bf16.mxu0 %v1255_v16 }
 0x28c   :  { %1258 = vmatpush3.bf16.msra.mxu0 %v1255_v16 }
 0x28d   :  { %v1259_v21 = vpack.c.bf16 %v667_v15, %v666_v14 }
 0x28f   :  { %1260 = vmatprep.subr.bf16.mxu0 %v1259_v21 }
 0x290   :  { %1262 = vmatpush3.bf16.msra.mxu0 %v1259_v21 }
 0x293   :  { %1103 = vmatmul.mubr.msk.f32.vlgmr.msra.gmra.mrb[16].mxu0 %vm696_vm0, %v669_v22 }
 0x294   :  { %1105 = vmatprep.mubr.msk.f32.mxu0 %vm696_vm0, %v670_v23 }
 0x297   :  { %1106 = vmatmul.mubr.msk.f32.gmra.mrb[18].mxu0 %vm696_vm0, %v671_v24 }
 0x29a   :  { %v684_v48 = vpop.permute.xlu0 %683  ;;  %v679_v49 = vpop.permute.xlu1 %678 }
 0x29e   :  { %v694_v19 = vpop.permute.xlu0 %693  ;;  %v689_v28 = vpop.permute.xlu1 %688 }
 0x2a2   :  { %v803_v37 = vpop.permute.xlu1 %802 }
 0x366   :  { %v1104_v62 = vpop.f32.mrb[16].mxu0 }
 0x367   :  { %v781_v1 = vadd.f32 %v1104_v62, %v684_v48  ;;  %v775_v2 = vpop.f32.mrb[17].mxu0 }
 0x368   :  { %v776_v7 = vadd.f32 %v775_v2, %v679_v49 }
 0x369   :  { %v795_v18 = vmax.f32 %v781_v1, 0.0 }
 0x36a   :  { %v794_v20 = vmax.f32 %v776_v7, 0.0  ;;  %v1107_v25 = vpop.f32.mrb[18].mxu0 }
 0x36b   :  { %v791_v29 = vadd.f32 %v1107_v25, %v694_v19  ;;  %v785_v30 = vpop.f32.mrb[19].mxu0 }
 0x36c   :  { %v1264_v31 = vpack.c.bf16 %v795_v18, %v794_v20  ;;  %v786_v32 = vadd.f32 %v785_v30, %v689_v28 }
 0x36d   :  { %v797_v33 = vmax.f32 %v791_v29, 0.0 }
 0x36e   :  { %v796_v34 = vmax.f32 %v786_v32, 0.0  ;;  %1265 = vmatpush3.bf16.msra.mxu1 %v1264_v31 }
 0x36f   :  { %1266 = vmatprep.subr.bf16.mxu1 %v1340_v26 }
 0x370   :  { %v1267_v35 = vpack.c.bf16 %v797_v33, %v796_v34 }
 0x372   :  { %1268 = vmatpush3.bf16.msra.mxu1 %v1267_v35 }
 0x375   :  { %1117 = vmatmul.mubr.msk.f32.vlgmr.msra.gmra.mrb[16].mxu1 %vm805_vm3, %v798_v36 }
 0x448   :  { %v875_v38 = vpop.f32.mrb[16].mxu1 }
 0x449   :  { %v876_v39 = vadd.f32 %v875_v38, %v803_v37  ;;  %v1118_v40 = vpop.f32.mrb[17].mxu1 }
 0x44b   :  { %1282 = vtanh.f32 %v876_v39 }
 0x455   :  { %v1283_v41 = vpop.eup %1282 }
 0x456   :  { %881 = vst.msk [vmem:[%s1553_s7] sm:$0x3] %vm880_vm4, %v1283_v41 }
 0x457   :  { %886 = vsyncpa [#allocation3], 1 }
 0x458   :  { %887 = vsyncpa [#allocation5], 1 }

</bundles_post_ra>
